<compile_context>
chip_gen: v7x
topology: tpu7x:2x2x1
jax: 0.10.0
libtpu: 0.0.40
codegen_flags: <defaults>
</compile_context>

<pallas_src>
import jax
import jax.numpy as jnp
from jax.experimental import pallas as pl
from jax.experimental.pallas import tpu as pltpu


MATMUL_DTYPE = jnp.bfloat16      # MXU-native on v5e/v6e/v7x; accumulation stays f32
TILE_B_MAX = 2048                # batch rows per grid step (raised from 512)
_SINGLE_STEP_MAX = 1024          # above this, force >= 2 grid steps (v7x: 2 TCs)
VMEM_LIMIT_BYTES = 32 * 1024 * 1024   # safe on all generations, covers the larger tiles
FUSE_TAIL_MAX_WIDTH = 128        # block-diag tail packing only while 2h <= one MXU tile (all gens)


# ----------------------------------------------------------------------------
# Kernels
# ----------------------------------------------------------------------------

def _fused_tail_kernel(
    s_ref, a_ref,                       # batch-tiled activations (f32)
    w1s_ref, w1a_ref, b1_ref,           # packed layer 1 (mu | reward), split by s/a rows
    w2_ref, b2_ref,                     # packed layer 2 (block-diagonal, 2h x 2h)
    w3_ref, b3_ref,                     # packed layer 3: cols [0,ns)=mu, col ns=reward
    out_ref,                            # (tile_b, ns+1): [:, :ns]=s+mu, [:, ns]=reward
):
    s = s_ref[...]                      # keep f32 copy for the s + mu add
    a = a_ref[...]
    ns = s.shape[1]

    # --- layer 1 (both heads fused on the output axis) ---
    h = (
        jnp.dot(s.astype(MATMUL_DTYPE), w1s_ref[...], preferred_element_type=jnp.float32)
        + jnp.dot(a.astype(MATMUL_DTYPE), w1a_ref[...], preferred_element_type=jnp.float32)
        + b1_ref[...]
    )
    h = jnp.maximum(h, 0.0)

    # --- layer 2 (block-diagonal keeps the two heads independent) ---
    h = jnp.dot(h.astype(MATMUL_DTYPE), w2_ref[...], preferred_element_type=jnp.float32) + b2_ref[...]
    h = jnp.maximum(h, 0.0)

    # --- layer 3: one matmul produces [mu | reward] ---
    y = jnp.dot(h.astype(MATMUL_DTYPE), w3_ref[...], preferred_element_type=jnp.float32) + b3_ref[...]

    # Single full-width store: pad s with one zero lane so the s-add only
    # touches the mu lanes, then write the whole (tile_b, ns+1) block at once.
    s_pad = jnp.concatenate([s, jnp.zeros((s.shape[0], 1), jnp.float32)], axis=1)
    out_ref[...] = y + s_pad


def _split_tail_kernel(
    s_ref, a_ref,
    w1s_ref, w1a_ref, b1_ref,           # layer 1 still fused (no zero blocks there)
    w2_ref, b2_ref, rw2_ref, rb2_ref,   # per-head layer 2
    w3_ref, b3_ref, rw3_ref, rb3_ref,   # per-head layer 3
    out_ref,                            # (tile_b, ns+1)
):
    s = s_ref[...]
    a = a_ref[...]
    hdim = w2_ref.shape[0]

    h1 = (
        jnp.dot(s.astype(MATMUL_DTYPE), w1s_ref[...], preferred_element_type=jnp.float32)
        + jnp.dot(a.astype(MATMUL_DTYPE), w1a_ref[...], preferred_element_type=jnp.float32)
        + b1_ref[...]
    )
    h1 = jnp.maximum(h1, 0.0)
    h1_mu = h1[:, :hdim]
    h1_rw = h1[:, hdim:]

    h2_mu = jnp.maximum(
        jnp.dot(h1_mu.astype(MATMUL_DTYPE), w2_ref[...], preferred_element_type=jnp.float32)
        + b2_ref[...], 0.0)
    h2_rw = jnp.maximum(
        jnp.dot(h1_rw.astype(MATMUL_DTYPE), rw2_ref[...], preferred_element_type=jnp.float32)
        + rb2_ref[...], 0.0)

    mu = jnp.dot(h2_mu.astype(MATMUL_DTYPE), w3_ref[...], preferred_element_type=jnp.float32) + b3_ref[...]
    rew = jnp.dot(h2_rw.astype(MATMUL_DTYPE), rw3_ref[...], preferred_element_type=jnp.float32) + rb3_ref[...]

    # Single full-width packed store.
    out_ref[...] = jnp.concatenate([s + mu, rew], axis=1)


# ----------------------------------------------------------------------------
# Parameter packing
# ----------------------------------------------------------------------------

def pack_params(params, num_states, matmul_dtype=MATMUL_DTYPE,
                fuse_tail_max_width=FUSE_TAIL_MAX_WIDTH):
    """Fuse the mu/reward heads into packed bf16 weights + f32 biases.

    Block-diagonal packing of layers 2/3 is only used while 2*hidden fits in
    one MXU tile; otherwise the tail stays per-head (no wasted MXU work).
    """
    (w1, b1, w2, b2, w3, b3, rw1, rb1, rw2, rb2, rw3, rb3, log_std) = params
    h = w1.shape[1]
    ns_out = w3.shape[1]
    fuse_tail = (2 * h) <= fuse_tail_max_width

    cast = lambda w: w.astype(matmul_dtype)

    w1cat = jnp.concatenate([w1, rw1], axis=1)                # (d_in, 2h)
    w1s = cast(w1cat[:num_states])                            # (ns, 2h)
    w1a = cast(w1cat[num_states:])                            # (na, 2h)
    b1cat = jnp.concatenate([b1, rb1], axis=1)                # (1, 2h)

    common = dict(fuse_tail=fuse_tail, num_states=num_states, hidden=h,
                  w1s=w1s, w1a=w1a, b1=b1cat, log_std=log_std)

    if fuse_tail:
        w2blk = jnp.zeros((2 * h, 2 * h), jnp.float32)
        w2blk = w2blk.at[:h, :h].set(w2).at[h:, h:].set(rw2)            # (2h, 2h)
        b2cat = jnp.concatenate([b2, rb2], axis=1)                      # (1, 2h)
        w3blk = jnp.zeros((2 * h, ns_out + 1), jnp.float32)
        w3blk = w3blk.at[:h, :ns_out].set(w3).at[h:, ns_out:].set(rw3)  # (2h, ns+1)
        b3cat = jnp.concatenate([b3, rb3], axis=1)                      # (1, ns+1)
        common.update(w2=cast(w2blk), b2=b2cat, w3=cast(w3blk), b3=b3cat)
    else:
        common.update(w2=cast(w2), b2=b2, rw2=cast(rw2), rb2=rb2,
                      w3=cast(w3), b3=b3, rw3=cast(rw3), rb3=rb3)
    return common


# ----------------------------------------------------------------------------
# Tile selection
# ----------------------------------------------------------------------------

def _round_up(x, m):
    return ((x + m - 1) // m) * m


def _choose_tile_b(B, requested=None):
    """Pick a batch tile: multiple of 8 (or the full batch), big enough to
    amortize per-step overhead, and giving >= 2 grid steps when B is large
    so both v7x TensorCores are used."""
    if requested is not None:
        t = int(requested)
        if t >= B:
            return B
        t = _round_up(max(t, 8), 8)     # (8,128) constraint: multiple of 8 unless full dim
        return B if t >= B else t
    if B <= _SINGLE_STEP_MAX:
        return B                        # single grid step for small batches
    t = min(TILE_B_MAX, _round_up(pl.cdiv(B, 2), 8))
    return B if t >= B else t


# ----------------------------------------------------------------------------
# Forward wrapper
# ----------------------------------------------------------------------------

def model_forward(s, a, packed, *, tile_b=None):
    """Returns (s + mu(x), std, reward(x)) exactly like Model.forward."""
    B, ns = s.shape
    na = a.shape[1]
    hidden = packed["hidden"]
    two_h = 2 * hidden
    fuse = packed["fuse_tail"]

    tile_b = _choose_tile_b(B, tile_b)
    grid = (pl.cdiv(B, tile_b),)

    def batch_spec(width):
        return pl.BlockSpec((tile_b, width), lambda i: (i, 0))

    def resident(shape):
        return pl.BlockSpec(shape, lambda i: (0, 0))

    if fuse:
        kernel = _fused_tail_kernel
        weight_ops = (packed["w1s"], packed["w1a"], packed["b1"],
                      packed["w2"], packed["b2"], packed["w3"], packed["b3"])
        weight_specs = [resident((ns, two_h)), resident((na, two_h)), resident((1, two_h)),
                        resident((two_h, two_h)), resident((1, two_h)),
                        resident((two_h, ns + 1)), resident((1, ns + 1))]
        tail_flops = 2 * B * (two_h * two_h + two_h * (ns + 1))
    else:
        kernel = _split_tail_kernel
        weight_ops = (packed["w1s"], packed["w1a"], packed["b1"],
                      packed["w2"], packed["b2"], packed["rw2"], packed["rb2"],
                      packed["w3"], packed["b3"], packed["rw3"], packed["rb3"])
        weight_specs = [resident((ns, two_h)), resident((na, two_h)), resident((1, two_h)),
                        resident((hidden, hidden)), resident((1, hidden)),
                        resident((hidden, hidden)), resident((1, hidden)),
                        resident((hidden, ns)), resident((1, ns)),
                        resident((hidden, 1)), resident((1, 1))]
        tail_flops = 2 * B * (2 * hidden * hidden + hidden * ns + hidden)

    flops = 2 * B * (ns * two_h + na * two_h) + tail_flops
    w_bytes = sum(int(x.size) * jnp.dtype(x.dtype).itemsize for x in weight_ops)
    bytes_accessed = int((s.size + a.size + B * (ns + 1)) * 4 + w_bytes)

    packed_out = pl.pallas_call(
        kernel,
        out_shape=jax.ShapeDtypeStruct((B, ns + 1), jnp.float32),
        grid=grid,
        in_specs=[batch_spec(ns), batch_spec(na)] + weight_specs,
        out_specs=batch_spec(ns + 1),
        compiler_params=pltpu.CompilerParams(
            dimension_semantics=("parallel",),
            vmem_limit_bytes=VMEM_LIMIT_BYTES),
        cost_estimate=pl.CostEstimate(
            flops=flops, transcendentals=0, bytes_accessed=bytes_accessed),
    )(s, a, *weight_ops)

    mean = packed_out[:, :ns]
    rew = packed_out[:, ns:]
    # std is batch-independent: compute once in the wrapper (no kernel traffic)
    std = jnp.broadcast_to(jnp.exp(jnp.clip(packed["log_std"], -20.0, 2.0)), (B, ns))
    return mean, std, rew


# ----------------------------------------------------------------------------
# Init + references
# ----------------------------------------------------------------------------

def init_params(key, num_states, num_actions, hidden, std=0.0):
    """Synthetic init matching nn.Linear shapes. Weights are (in, out) so the kernel does x @ W."""
    d_in = num_states + num_actions
    keys = jax.random.split(key, 12)

    def lin(kw, kb, fan_in, fan_out):
        bound = 1.0 / jnp.sqrt(fan_in)
        w = jax.random.uniform(kw, (fan_in, fan_out), jnp.float32, -bound, bound)
        b = jax.random.uniform(kb, (1, fan_out), jnp.float32, -bound, bound)
        return w, b

    w1, b1 = lin(keys[0], keys[1], d_in, hidden)
    w2, b2 = lin(keys[2], keys[3], hidden, hidden)
    w3, b3 = lin(keys[4], keys[5], hidden, num_states)

    rw1, rb1 = lin(keys[6], keys[7], d_in, hidden)
    rw2, rb2 = lin(keys[8], keys[9], hidden, hidden)
    rw3, rb3 = lin(keys[10], keys[11], hidden, 1)

    log_std = jnp.ones((1, num_states), jnp.float32) * std
    return (w1, b1, w2, b2, w3, b3, rw1, rb1, rw2, rb2, rw3, rb3, log_std)


def reference_packed(s, a, packed):
    """Plain-JAX reference using the exact same packed bf16 weights / f32 accumulation."""
    ns = s.shape[1]

    def mm(x, w):
        return jnp.dot(x.astype(w.dtype), w, preferred_element_type=jnp.float32)

    h1 = jnp.maximum(mm(s, packed["w1s"]) + mm(a, packed["w1a"]) + packed["b1"], 0.0)
    if packed["fuse_tail"]:
        h2 = jnp.maximum(mm(h1, packed["w2"]) + packed["b2"], 0.0)
        y = mm(h2, packed["w3"]) + packed["b3"]
        mean = s + y[:, :ns]
        rew = y[:, ns:]
    else:
        hd = packed["hidden"]
        h2m = jnp.maximum(mm(h1[:, :hd], packed["w2"]) + packed["b2"], 0.0)
        h2r = jnp.maximum(mm(h1[:, hd:], packed["rw2"]) + packed["rb2"], 0.0)
        mean = s + mm(h2m, packed["w3"]) + packed["b3"]
        rew = mm(h2r, packed["rw3"]) + packed["rb3"]
    std = jnp.broadcast_to(jnp.exp(jnp.clip(packed["log_std"], -20.0, 2.0)), mean.shape)
    return mean, std, rew


def reference_forward(s, a, params):
    """Pure-f32 reference mirroring the PyTorch forward (for deviation reporting)."""
    (w1, b1, w2, b2, w3, b3, rw1, rb1, rw2, rb2, rw3, rb3, log_std) = params
    x = jnp.concatenate([s, a], axis=1)
    h = jnp.maximum(x @ w1 + b1, 0.0)
    h = jnp.maximum(h @ w2 + b2, 0.0)
    mu = h @ w3 + b3
    std = jnp.broadcast_to(jnp.exp(jnp.clip(log_std, -20.0, 2.0)), mu.shape)
    hr = jnp.maximum(x @ rw1 + rb1, 0.0)
    hr = jnp.maximum(hr @ rw2 + rb2, 0.0)
    rew = hr @ rw3 + rb3
    return s + mu, std, rew


# ----------------------------------------------------------------------------
# Main
# ----------------------------------------------------------------------------

if __name__ == "__main__":
    key = jax.random.PRNGKey(0)

    # ---- test 1: small shapes, fused-tail kernel (2h = 64 <= 128), 1 grid step ----
    ns, na, hidden, batch = 8, 4, 32, 8
    k_s, k_a, k_p, key = jax.random.split(key, 4)
    s = jax.random.normal(k_s, (batch, ns), jnp.float32)
    a = jax.random.normal(k_a, (batch, na), jnp.float32)
    params = init_params(k_p, ns, na, hidden, std=0.0)
    packed = pack_params(params, ns)
    assert packed["fuse_tail"]

    mean, std, rew = model_forward(s, a, packed)
    jax.block_until_ready((mean, std, rew))

    mean_k, std_k, rew_k = reference_packed(s, a, packed)
    assert mean.shape == (batch, ns) and std.shape == (batch, ns) and rew.shape == (batch, 1)
    assert jnp.allclose(mean, mean_k, atol=5e-4, rtol=5e-4)
    assert jnp.allclose(std, std_k, atol=1e-6, rtol=1e-6)
    assert jnp.allclose(rew, rew_k, atol=5e-4, rtol=5e-4)

    mean_r, _, rew_r = reference_forward(s, a, params)
    max_dev = max(float(jnp.max(jnp.abs(mean - mean_r))),
                  float(jnp.max(jnp.abs(rew - rew_r))))
    print(f"[fused tail]  max |bf16 - f32| deviation: {max_dev:.2e}")

    # ---- test 2: split-tail kernel (2h = 320 > 128), 2 grid steps + remainder rows ----
    ns2, na2, hidden2, batch2 = 8, 4, 160, 1043
    k_s2, k_a2, k_p2, key = jax.random.split(key, 4)
    s2 = jax.random.normal(k_s2, (batch2, ns2), jnp.float32)
    a2 = jax.random.normal(k_a2, (batch2, na2), jnp.float32)
    params2 = init_params(k_p2, ns2, na2, hidden2, std=0.0)
    packed2 = pack_params(params2, ns2)
    assert not packed2["fuse_tail"]

    mean2, std2, rew2 = model_forward(s2, a2, packed2)
    jax.block_until_ready((mean2, std2, rew2))

    mean2_k, std2_k, rew2_k = reference_packed(s2, a2, packed2)
    assert mean2.shape == (batch2, ns2) and rew2.shape == (batch2, 1)
    assert jnp.allclose(mean2, mean2_k, atol=1e-3, rtol=1e-3)
    assert jnp.allclose(std2, std2_k, atol=1e-6, rtol=1e-6)
    assert jnp.allclose(rew2, rew2_k, atol=1e-3, rtol=1e-3)
    print("[split tail]  multi-step grid + remainder check passed")

    print("KERNEL_OK")
</pallas_src>

<mosaic_0001>
module attributes {stable_mosaic.version = 11 : i64} {
  func.func @_fused_tail_kernel(%arg0: i32, %arg1: memref<8x8xf32, #tpu.memory_space<vmem>>, %arg2: memref<8x4xf32, #tpu.memory_space<vmem>>, %arg3: memref<8x64xbf16, #tpu.memory_space<vmem>>, %arg4: memref<4x64xbf16, #tpu.memory_space<vmem>>, %arg5: memref<1x64xf32, #tpu.memory_space<vmem>>, %arg6: memref<64x64xbf16, #tpu.memory_space<vmem>>, %arg7: memref<1x64xf32, #tpu.memory_space<vmem>>, %arg8: memref<64x9xbf16, #tpu.memory_space<vmem>>, %arg9: memref<1x9xf32, #tpu.memory_space<vmem>>, %arg10: memref<8x9xf32, #tpu.memory_space<vmem>>) attributes {dimension_semantics = [#tpu.dimension_semantics<parallel>], iteration_bounds = array<i64: 1>, scalar_prefetch = 0 : i64, scratch_operands = 0 : i64, tpu.core_type = #tpu.core_type<tc>, window_params = [{transform_indices = @transform_0, window_bounds = array<i64: 8, 8>}, {transform_indices = @transform_1, window_bounds = array<i64: 8, 4>}, {pipeline_mode = #tpu.pipeline_mode<synchronous>, transform_indices = @transform_2, window_bounds = array<i64: 8, 64>}, {pipeline_mode = #tpu.pipeline_mode<synchronous>, transform_indices = @transform_3, window_bounds = array<i64: 4, 64>}, {pipeline_mode = #tpu.pipeline_mode<synchronous>, transform_indices = @transform_4, window_bounds = array<i64: 1, 64>}, {pipeline_mode = #tpu.pipeline_mode<synchronous>, transform_indices = @transform_5, window_bounds = array<i64: 64, 64>}, {pipeline_mode = #tpu.pipeline_mode<synchronous>, transform_indices = @transform_6, window_bounds = array<i64: 1, 64>}, {pipeline_mode = #tpu.pipeline_mode<synchronous>, transform_indices = @transform_7, window_bounds = array<i64: 64, 9>}, {pipeline_mode = #tpu.pipeline_mode<synchronous>, transform_indices = @transform_8, window_bounds = array<i64: 1, 9>}, {transform_indices = @transform_9, window_bounds = array<i64: 8, 9>}]} {
    %c0 = arith.constant 0 : index
    %c0_0 = arith.constant 0 : index
    %0 = vector.load %arg1[%c0, %c0_0] : memref<8x8xf32, #tpu.memory_space<vmem>>, vector<8x8xf32>
    %c0_1 = arith.constant 0 : index
    %c0_2 = arith.constant 0 : index
    %1 = vector.load %arg2[%c0_1, %c0_2] : memref<8x4xf32, #tpu.memory_space<vmem>>, vector<8x4xf32>
    %2 = arith.truncf %0 : vector<8x8xf32> to vector<8x8xbf16>
    %c0_3 = arith.constant 0 : index
    %c0_4 = arith.constant 0 : index
    %3 = vector.load %arg3[%c0_3, %c0_4] : memref<8x64xbf16, #tpu.memory_space<vmem>>, vector<8x64xbf16>
    %cst = arith.constant dense<0.000000e+00> : vector<8x64xf32>
    %4 = tpu.matmul %2, %3, %cst {dimension_numbers = #tpu.dot_dimension_numbers<[1], [0], [0], [1], [0, 0, 1, 1], [], []>} : vector<8x8xbf16>, vector<8x64xbf16>, vector<8x64xf32> -> vector<8x64xf32>
    %5 = arith.truncf %1 : vector<8x4xf32> to vector<8x4xbf16>
    %c0_5 = arith.constant 0 : index
    %c0_6 = arith.constant 0 : index
    %6 = vector.load %arg4[%c0_5, %c0_6] : memref<4x64xbf16, #tpu.memory_space<vmem>>, vector<4x64xbf16>
    %cst_7 = arith.constant dense<0.000000e+00> : vector<8x64xf32>
    %7 = tpu.matmul %5, %6, %cst_7 {dimension_numbers = #tpu.dot_dimension_numbers<[1], [0], [0], [1], [0, 0, 1, 1], [], []>} : vector<8x4xbf16>, vector<4x64xbf16>, vector<8x64xf32> -> vector<8x64xf32>
    %8 = arith.addf %4, %7 : vector<8x64xf32>
    %c0_8 = arith.constant 0 : index
    %c0_9 = arith.constant 0 : index
    %9 = vector.load %arg5[%c0_8, %c0_9] : memref<1x64xf32, #tpu.memory_space<vmem>>, vector<1x64xf32>
    %10 = vector.broadcast %9 : vector<1x64xf32> to vector<8x64xf32>
    %11 = arith.addf %8, %10 : vector<8x64xf32>
    %cst_10 = arith.constant 0.000000e+00 : f32
    %12 = vector.broadcast %cst_10 : f32 to vector<8x64xf32>
    %13 = arith.maximumf %11, %12 : vector<8x64xf32>
    %14 = arith.truncf %13 : vector<8x64xf32> to vector<8x64xbf16>
    %c0_11 = arith.constant 0 : index
    %c0_12 = arith.constant 0 : index
    %15 = vector.load %arg6[%c0_11, %c0_12] : memref<64x64xbf16, #tpu.memory_space<vmem>>, vector<64x64xbf16>
    %cst_13 = arith.constant dense<0.000000e+00> : vector<8x64xf32>
    %16 = tpu.matmul %14, %15, %cst_13 {dimension_numbers = #tpu.dot_dimension_numbers<[1], [0], [0], [1], [0, 0, 1, 1], [], []>} : vector<8x64xbf16>, vector<64x64xbf16>, vector<8x64xf32> -> vector<8x64xf32>
    %c0_14 = arith.constant 0 : index
    %c0_15 = arith.constant 0 : index
    %17 = vector.load %arg7[%c0_14, %c0_15] : memref<1x64xf32, #tpu.memory_space<vmem>>, vector<1x64xf32>
    %18 = vector.broadcast %17 : vector<1x64xf32> to vector<8x64xf32>
    %19 = arith.addf %16, %18 : vector<8x64xf32>
    %cst_16 = arith.constant 0.000000e+00 : f32
    %20 = vector.broadcast %cst_16 : f32 to vector<8x64xf32>
    %21 = arith.maximumf %19, %20 : vector<8x64xf32>
    %22 = arith.truncf %21 : vector<8x64xf32> to vector<8x64xbf16>
    %c0_17 = arith.constant 0 : index
    %c0_18 = arith.constant 0 : index
    %23 = vector.load %arg8[%c0_17, %c0_18] : memref<64x9xbf16, #tpu.memory_space<vmem>>, vector<64x9xbf16>
    %cst_19 = arith.constant dense<0.000000e+00> : vector<8x9xf32>
    %24 = tpu.matmul %22, %23, %cst_19 {dimension_numbers = #tpu.dot_dimension_numbers<[1], [0], [0], [1], [0, 0, 1, 1], [], []>} : vector<8x64xbf16>, vector<64x9xbf16>, vector<8x9xf32> -> vector<8x9xf32>
    %c0_20 = arith.constant 0 : index
    %c0_21 = arith.constant 0 : index
    %25 = vector.load %arg9[%c0_20, %c0_21] : memref<1x9xf32, #tpu.memory_space<vmem>>, vector<1x9xf32>
    %26 = vector.broadcast %25 : vector<1x9xf32> to vector<8x9xf32>
    %27 = arith.addf %24, %26 : vector<8x9xf32>
    %cst_22 = arith.constant 0.000000e+00 : f32
    %28 = vector.broadcast %cst_22 : f32 to vector<8x1xf32>
    %29 = tpu.concatenate %0, %28 in 1 : vector<8x8xf32>, vector<8x1xf32> -> vector<8x9xf32>
    %30 = arith.addf %27, %29 : vector<8x9xf32>
    %c0_23 = arith.constant 0 : index
    %c0_24 = arith.constant 0 : index
    %31 = vector.load %arg10[%c0_23, %c0_24] : memref<8x9xf32, #tpu.memory_space<vmem>>, vector<8x9xf32>
    tpu.vector_store %arg10[%c0_23, %c0_24], %30 {strides = array<i32>} : memref<8x9xf32, #tpu.memory_space<vmem>>, vector<8x9xf32>,
    return
  }
  func.func @transform_0(%arg0: i32) -> (i32, i32) {
    %c0_i32 = arith.constant 0 : i32
    %c0_i32_0 = arith.constant 0 : i32
    return %arg0, %c0_i32 : i32, i32
  }
  func.func @transform_1(%arg0: i32) -> (i32, i32) {
    %c0_i32 = arith.constant 0 : i32
    %c0_i32_0 = arith.constant 0 : i32
    return %arg0, %c0_i32 : i32, i32
  }
  func.func @transform_2(%arg0: i32) -> (i32, i32) {
    %c0_i32 = arith.constant 0 : i32
    %c0_i32_0 = arith.constant 0 : i32
    %c0_i32_1 = arith.constant 0 : i32
    return %c0_i32, %c0_i32_0 : i32, i32
  }
  func.func @transform_3(%arg0: i32) -> (i32, i32) {
    %c0_i32 = arith.constant 0 : i32
    %c0_i32_0 = arith.constant 0 : i32
    %c0_i32_1 = arith.constant 0 : i32
    return %c0_i32, %c0_i32_0 : i32, i32
  }
  func.func @transform_4(%arg0: i32) -> (i32, i32) {
    %c0_i32 = arith.constant 0 : i32
    %c0_i32_0 = arith.constant 0 : i32
    %c0_i32_1 = arith.constant 0 : i32
    return %c0_i32, %c0_i32_0 : i32, i32
  }
  func.func @transform_5(%arg0: i32) -> (i32, i32) {
    %c0_i32 = arith.constant 0 : i32
    %c0_i32_0 = arith.constant 0 : i32
    %c0_i32_1 = arith.constant 0 : i32
    return %c0_i32, %c0_i32_0 : i32, i32
  }
  func.func @transform_6(%arg0: i32) -> (i32, i32) {
    %c0_i32 = arith.constant 0 : i32
    %c0_i32_0 = arith.constant 0 : i32
    %c0_i32_1 = arith.constant 0 : i32
    return %c0_i32, %c0_i32_0 : i32, i32
  }
  func.func @transform_7(%arg0: i32) -> (i32, i32) {
    %c0_i32 = arith.constant 0 : i32
    %c0_i32_0 = arith.constant 0 : i32
    %c0_i32_1 = arith.constant 0 : i32
    return %c0_i32, %c0_i32_0 : i32, i32
  }
  func.func @transform_8(%arg0: i32) -> (i32, i32) {
    %c0_i32 = arith.constant 0 : i32
    %c0_i32_0 = arith.constant 0 : i32
    %c0_i32_1 = arith.constant 0 : i32
    return %c0_i32, %c0_i32_0 : i32, i32
  }
  func.func @transform_9(%arg0: i32) -> (i32, i32) {
    %c0_i32 = arith.constant 0 : i32
    %c0_i32_0 = arith.constant 0 : i32
    return %arg0, %c0_i32 : i32, i32
  }
}

</mosaic_0001>

<bundles_post_ra>
// kernel: tpu_custom_call.1
= control target key start
LH: loop header
LB: loop body
LE: loop exit
PB: predicated region body
PF: predicated region fallthrough
CT: control target
= control target key end

     0   :  { %vm44_vm0 = vcmask 1041408   ;;  %v431_v2 = vmov 0.0   ;;  %vm92_vm1 = vcmask 1043456   ;;  %vm432_vm2 = vmmov 0   ;;  %s554_s0 = inlined_call_operand.vmem [shape: f32[8,8], index: 0, kind: input, shape index: {}]   ;;  %s555_s1 = inlined_call_operand.vmem [shape: f32[8,4], index: 1, kind: input, shape index: {}]   ;;  %s556_s2 = inlined_call_operand.vmem [shape: bf16[8,64], index: 2, kind: input, shape index: {}]   ;;  %s557_s3 = inlined_call_operand.vmem [shape: bf16[4,64], index: 3, kind: input, shape index: {}]   ;;  %s558_s4 = inlined_call_operand.vmem [shape: f32[1,64], index: 4, kind: input, shape index: {}]   ;;  %s559_s5 = inlined_call_operand.vmem [shape: bf16[64,64], index: 5, kind: input, shape index: {}]   ;;  %s560_s6 = inlined_call_operand.vmem [shape: f32[1,64], index: 6, kind: input, shape index: {}]   ;;  %s561_s7 = inlined_call_operand.vmem [shape: bf16[64,9], index: 7, kind: input, shape index: {}]   ;;  %s562_s8 = inlined_call_operand.vmem [shape: f32[1,9], index: 8, kind: input, shape index: {}]   ;;  %s563_s9 = inlined_call_operand.hbm [shape: f32[8,9], index: 9, kind: output, shape index: {}]  }
   0x1   :  { %v39_v0 = vld [vmem:[%s557_s3] sm:$0x3]  ;;  %360 = vmatprep.subr.bf16.mxu0 %v431_v2  ;;  %366 = vmatprep.subr.bf16.mxu1 %v431_v2  ;;  %vm40_vm3 = vcmask 31744   ;;  %vm88_vm4 = vcmask 64512   ;;  %v400_v10 = vld [vmem:[%s559_s5 + $0x8] sm:$0xff]  }
   0x2   :  { %v37_v1 = vld [vmem:[%s556_s2] sm:$0xf]  ;;  %v46_v3 = vsel %vm44_vm0, %v39_v0, 0  ;;  %362 = vmatprep.mubr.msk.bf16.mxu0 %vm432_vm2, %v431_v2  ;;  %368 = vmatprep.mubr.msk.bf16.mxu1 %vm432_vm2, %v431_v2 }
   0x3   :  { %v35_v4 = vld [vmem:[%s555_s1] sm:$0xff]  ;;  %361 = vmatpush3.bf16.msra.mxu0 %v46_v3  ;;  %v94_v6 = vsel %vm92_vm1, %v37_v1, 0 }
   0x4   :  { %v496_v5 = vld [vmem:[%s554_s0] sm:$0xff]  ;;  %v38_v7 = vpack.c.bf16 %v35_v4, %v35_v4  ;;  %367 = vmatpush3.bf16.msra.mxu1 %v94_v6  ;;  %372 = vmatprep.subr.bf16.mxu0 %v431_v2 }
   0x5   :  { %v36_v8 = vpack.c.bf16 %v496_v5, %v496_v5  ;;  %v399_v9 = vld [vmem:[%s559_s5] sm:$0xff]   ;;  %384 = vmatprep.subr.bf16.mxu1 %v431_v2 }
   0x6   :  { %363 = vmatmul.mubr.msk.bf16.vlgmr.msra.gmra.mrb[0].mxu0 %vm40_vm3, %v38_v7 }
   0x7   :  { %369 = vmatmul.mubr.msk.bf16.vlgmr.msra.gmra.mrb[0].mxu1 %vm88_vm4, %v36_v8  ;;  %373 = vmatpush3.bf16.msra.mxu0 %v399_v9 }
   0x8   :  { %374 = vmatprep.subr.bf16.mxu0 %v431_v2  ;;  %380 = vmatprep.mubr.msk.bf16.mxu0 %vm432_vm2, %v431_v2 }
   0x9   :  { %392 = vmatprep.mubr.msk.bf16.mxu1 %vm432_vm2, %v431_v2 }
   0xa   :  { %14 = vsyncpa [#allocation3], 0  ;;  %v401_v11 = vld [vmem:[%s559_s5 + $0x10] sm:$0xff]   ;;  %v402_v12 = vld [vmem:[%s559_s5 + $0x18] sm:$0xff]   ;;  %vm185_vm5 = vcmask 523264   ;;  %v313_v40 = vsel %vm88_vm4, %v496_v5, 0.0 }
   0xb   :  { %375 = vmatpush3.bf16.msra.mxu0 %v400_v10  ;;  %v403_v13 = vld [vmem:[%s561_s7] sm:$0xff]   ;;  %v404_v14 = vld [vmem:[%s561_s7 + $0x8] sm:$0xff]   ;;  %v405_v28 = vld [vmem:[%s561_s7 + $0x10] sm:$0xff]   ;;  %vm315_vm6 = vcmask 72704  }
   0xc   :  { %376 = vmatprep.subr.bf16.mxu0 %v431_v2  ;;  %385 = vmatpush3.bf16.msra.mxu1 %v403_v13  ;;  %v333_v17 = vld [vmem:[%s558_s4] ss:$0 sm:$0xff]  ;;  %v406_v29 = vld [vmem:[%s561_s7 + $0x18] sm:$0xff]   ;;  %s433_s7 = smov [#allocation2]  }
   0xd   :  { %386 = vmatprep.subr.bf16.mxu1 %v431_v2  ;;  %v334_v30 = vld [vmem:[%s560_s6] ss:$0 sm:$0xff]  ;;  %s323_s12 = sshll.u32 %s433_s7, 4  ;;  %s324_s12 = int_to_ptr.vmem [resolvable:$true] %s323_s12 }
   0xe   :  { %v340_v38 = vld [vmem:[%s562_s8] ss:$0 sm:$0xff]  ;;  %s407_s6 = scalar_lea.vmem %s324_s12, 128  ;;  %p412_p1 = scmp.lt.s32.totalorder %s324_s12, %s324_s12 }
   0xf   :  { %377 = vmatpush3.bf16.msra.mxu0 %v401_v11  ;;  %p408_p0 = scmp.ne.s32.totalorder %s324_s12, %s407_s6  ;;  %p413_p2 = scmp.lt.s32.totalorder %s407_s6, %s407_s6 }
  0x10   :  { %378 = vmatprep.subr.bf16.mxu0 %v431_v2  ;;  %387 = vmatpush3.bf16.msra.mxu1 %v404_v14 }
  0x11   :  { %388 = vmatprep.subr.bf16.mxu1 %v431_v2  ;;  %p414_p3 = por %p413_p2, %p412_p1 }
  0x13   :  { %379 = vmatpush3.bf16.msra.mxu0 %v402_v12  ;;  %p415_p4 = pnand %p414_p3, %p408_p0 }
  0x14   :  { %389 = vmatpush3.bf16.msra.mxu1 %v405_v28 }
  0x15   :  { %390 = vmatprep.subr.bf16.mxu1 %v431_v2 }
  0x18   :  { %391 = vmatpush3.bf16.msra.mxu1 %v406_v29 }
  0xd9   :  { %v82_v15 = vpop.f32.mrb[0].mxu0 }
  0xda   :  { %v130_v16 = vpop.f32.mrb[0].mxu1  ;;  %v364_v18 = vpop.f32.mrb[1].mxu0 }
  0xdb   :  { %v131_v19 = vadd.f32 %v130_v16, %v82_v15  ;;  %v370_v20 = vpop.f32.mrb[1].mxu1  ;;  %v85_v21 = vpop.f32.mrb[2].mxu0 }
  0xdc   :  { %v133_v22 = vpop.f32.mrb[2].mxu1  ;;  %v365_v23 = vpop.f32.mrb[3].mxu0 }
  0xdd   :  { %v143_v24 = vadd.f32 %v333_v17, %v131_v19  ;;  %v371_v25 = vpop.f32.mrb[3].mxu1 }
  0xdf   :  { %v144_v26 = vmax.f32 %v143_v24, 0.0 }
  0xe1   :  { %v145_v27 = vpack.c.bf16 %v144_v26, %v144_v26 }
  0xe3   :  { %381 = vmatmul.mubr.msk.bf16.vlgmr.msra.gmra.mrb[4].mxu0 %vm185_vm5, %v145_v27 }
 0x1b6   :  { %v223_v31 = vpop.f32.mrb[4].mxu0 }
 0x1b7   :  { %v224_v32 = vadd.f32 %v334_v30, %v223_v31  ;;  %v382_v33 = vpop.f32.mrb[5].mxu0 }
 0x1b8   :  { %v226_v34 = vpop.f32.mrb[6].mxu0 }
 0x1b9   :  { %v229_v35 = vmax.f32 %v224_v32, 0.0  ;;  %v383_v36 = vpop.f32.mrb[7].mxu0 }
 0x1bb   :  { %v230_v37 = vpack.c.bf16 %v229_v35, %v229_v35 }
 0x1bd   :  { %393 = vmatmul.mubr.msk.bf16.vlgmr.msra.gmra.mrb[4].mxu1 %vm185_vm5, %v230_v37 }
 0x290   :  { %v307_v39 = vpop.f32.mrb[4].mxu1 }
 0x291   :  { %v308_v41 = vadd.f32 %v340_v38, %v307_v39  ;;  %v394_v42 = vpop.f32.mrb[5].mxu1 }
 0x292   :  { %v310_v43 = vpop.f32.mrb[6].mxu1 }
 0x293   :  { %v314_v44 = vadd.f32 %v313_v40, %v308_v41  ;;  %v395_v45 = vpop.f32.mrb[7].mxu1 }
 0x295   :  { %316 = vst.msk [vmem:[#allocation2] sm:$0xff] %vm315_vm6, %v314_v44 }
 0x296   :  { %418 = shalt.err (!%p415_p4)
}
 0x297   :  { %s419_s14 = scalar_lea.hbm %s563_s9, 128 }
 0x298   :  { %p420_p5 = scmp.ne.s32.totalorder %s563_s9, %s419_s14  ;;  %p423_p6 = scmp.lt.u32.totalorder %s419_s14, %s563_s9 }
 0x29a   :  { %p425_p7 = pnand %p423_p6, %p420_p5 }
 0x29c   :  { %428 = shalt.err (!%p425_p7)
}
 0x29d   :  { %326 = dma.vmem_to_hbm [thread:$0]  %s324_s12, 128, %s563_s9, [#allocation3]  }
 0x29e   :  { %429 = dma.done.wait [#allocation3], 128  }
 0x29f   :  { %430 = vsyncadd [#allocation3], 4294967168 }
 0x2a0   :  { %330 = vsyncpa [#allocation3], 1 }

</bundles_post_ra>
